<compile_context>
chip_gen: v5e
topology: v5e:2x2
jax: 0.10.0
libtpu: 0.0.40
codegen_flags: <defaults>
</compile_context>

<pallas_src>
import functools

import jax
import jax.numpy as jnp
from jax import lax
from jax.experimental import pallas as pl
from jax.experimental.pallas import tpu as pltpu


def _block_b_kernel(x_ref, w1_ref, b1_ref, w2_ref, b2_ref, w3_ref, b3_ref,
                    m_ref, o_ref, *, ksize, W, res_scale):
    """One batch image per grid step; everything is (C, H*W) lane-dense."""
    HWp = x_ref.shape[2]
    pad = ksize // 2

    xf = x_ref[0]                                   # (Cp, HWp) f32
    x_bf = xf.astype(jnp.bfloat16)

    # conv1 (1x1, expand) + ReLU : (C1p, HWp)
    h1 = jnp.dot(w1_ref[...], x_bf, preferred_element_type=jnp.float32)
    h1 = jnp.maximum(h1 + b1_ref[...], 0.0)

    # conv2 (1x1, linear) : (C2p, HWp)
    h2 = jnp.dot(w2_ref[...], h1.astype(jnp.bfloat16),
                 preferred_element_type=jnp.float32)
    h2 = h2 + b2_ref[...]

    # conv3 (kxk, padding k//2) as one im2col matmul.
    # Shift tap (ky,kx) by d = (ky-pad)*W + (kx-pad) along the flattened
    # spatial axis with an XLU roll; zero out-of-image contributions with the
    # precomputed per-tap mask (handles both image edges and row wrap-around).
    masks = m_ref[...]                              # (k*k, HWp) f32, 0/1
    taps = []
    for ky in range(ksize):
        for kx in range(ksize):
            t = ky * ksize + kx
            d = (ky - pad) * W + (kx - pad)
            rolled = h2 if d == 0 else pltpu.roll(h2, shift=(-d) % HWp, axis=1)
            taps.append(rolled * masks[t:t + 1, :])
    stacked = jnp.concatenate(taps, axis=0)         # (k*k*C2p, HWp)

    y = jnp.dot(w3_ref[...], stacked.astype(jnp.bfloat16),
                preferred_element_type=jnp.float32)
    y = y + b3_ref[...]

    # residual: res * res_scale + x  (f32), lane-dense store
    o_ref[...] = (y * res_scale + xf)[None].astype(o_ref.dtype)


def _round_up(v, m):
    return (v + m - 1) // m * m


def prepare_block_b_params(w1_t, b1, w2_t, b2, w3_t, b3, H, W):
    """Torch-layout (OIHW) effective weights -> padded kernel-layout tensors."""
    C1, Cin = w1_t.shape[:2]
    C2 = w2_t.shape[0]
    Cout, _, k, _ = w3_t.shape
    assert k % 2 == 1, "only odd kernel sizes match symmetric SAME padding"
    assert Cout == Cin, "residual add requires Cout == Cin"

    Cp = _round_up(Cin, 8)           # padded in/out channels (residual)
    C1p = _round_up(C1, 8)
    C2p = _round_up(C2, 8)
    HWp = _round_up(H * W, 128)      # lane-dense flattened spatial axis

    def pad2(w, r, c):
        return jnp.pad(w, ((0, r - w.shape[0]), (0, c - w.shape[1])))

    w1k = pad2(w1_t[:, :, 0, 0], C1p, Cp).astype(jnp.bfloat16)    # (C1p, Cp)
    w2k = pad2(w2_t[:, :, 0, 0], C2p, C1p).astype(jnp.bfloat16)   # (C2p, C1p)

    w3p = jnp.pad(w3_t, ((0, Cp - Cout), (0, C2p - C2), (0, 0), (0, 0)))
    # (Cout_p, ky, kx, C2p) -> (Cout_p, k*k*C2p) matching the tap/channel
    # concatenation order used in the kernel (row = (ky*k+kx)*C2p + c).
    w3k = jnp.transpose(w3p, (0, 2, 3, 1)).reshape(Cp, k * k * C2p)
    w3k = w3k.astype(jnp.bfloat16)

    def padb(b, r):
        return jnp.pad(b.reshape(-1), (0, r - b.shape[0])) \
                  .reshape(r, 1).astype(jnp.float32)

    b1k, b2k, b3k = padb(b1, C1p), padb(b2, C2p), padb(b3, Cp)

    # Per-tap validity mask on the flattened (lane-padded) spatial axis.
    pad_ = k // 2
    idx = jnp.arange(HWp, dtype=jnp.int32)
    y, x = idx // W, idx % W
    masks = []
    for ky in range(k):
        for kx in range(k):
            dy, dx = ky - pad_, kx - pad_
            ok = (y + dy >= 0) & (y + dy < H) & (x + dx >= 0) & (x + dx < W)
            masks.append(ok.astype(jnp.float32))
    masks = jnp.stack(masks, axis=0)                # (k*k, HWp)

    return dict(w1=w1k, b1=b1k, w2=w2k, b2=b2k, w3=w3k, b3=b3k, masks=masks,
                ksize=k, Cp=Cp, C1p=C1p, C2p=C2p, HWp=HWp)


def block_b_forward(x_nchw, p, *, res_scale=1.0):
    N, Cin, H, W = x_nchw.shape
    ksize, Cp, C1p, C2p, HWp = p["ksize"], p["Cp"], p["C1p"], p["C2p"], p["HWp"]
    K3 = ksize * ksize * C2p

    xf = x_nchw.reshape(N, Cin, H * W)
    xf = jnp.pad(xf, ((0, 0), (0, Cp - Cin), (0, HWp - H * W)))

    kernel = functools.partial(_block_b_kernel, ksize=ksize, W=W,
                               res_scale=float(res_scale))

    out = pl.pallas_call(
        kernel,
        out_shape=jax.ShapeDtypeStruct((N, Cp, HWp), x_nchw.dtype),
        grid_spec=pltpu.PrefetchScalarGridSpec(
            num_scalar_prefetch=0,
            grid=(N,),
            in_specs=[
                pl.BlockSpec((1, Cp, HWp), lambda n: (n, 0, 0)),      # x
                pl.BlockSpec((C1p, Cp), lambda n: (0, 0)),            # w1
                pl.BlockSpec((C1p, 1), lambda n: (0, 0)),             # b1
                pl.BlockSpec((C2p, C1p), lambda n: (0, 0)),           # w2
                pl.BlockSpec((C2p, 1), lambda n: (0, 0)),             # b2
                pl.BlockSpec((Cp, K3), lambda n: (0, 0)),             # w3 (im2col)
                pl.BlockSpec((Cp, 1), lambda n: (0, 0)),              # b3
                pl.BlockSpec((ksize * ksize, HWp), lambda n: (0, 0)), # masks
            ],
            out_specs=pl.BlockSpec((1, Cp, HWp), lambda n: (n, 0, 0)),
        ),
        compiler_params=pltpu.CompilerParams(
            dimension_semantics=("parallel",),
            vmem_limit_bytes=32 * 1024 * 1024),
    )(xf, p["w1"], p["b1"], p["w2"], p["b2"], p["w3"], p["b3"], p["masks"])

    return out[:, :Cin, :H * W].reshape(N, Cin, H, W)


# ----------------------- parameter setup (plain JAX glue) -----------------------

def _weight_norm(v, g):
    # v: (Cout, Cin, kh, kw) torch layout, g: (Cout,)
    norm = jnp.sqrt(jnp.sum(v * v, axis=(1, 2, 3), keepdims=True))
    return g.reshape(-1, 1, 1, 1) * v / norm


def init_block_b_params(key, n_feats, ksize):
    expand, linear = 6, 0.8
    c1, c2 = n_feats * expand, int(n_feats * linear)
    keys = jax.random.split(key, 9)

    def make_conv(kv, kg, kb, cout, cin, k):
        v = jax.random.normal(kv, (cout, cin, k, k), jnp.float32) * 0.1
        g = jax.random.uniform(kg, (cout,), jnp.float32, 0.5, 1.5)
        b = jax.random.normal(kb, (cout,), jnp.float32) * 0.05
        return _weight_norm(v, g), b          # effective weight, OIHW layout

    w1, b1 = make_conv(keys[0], keys[1], keys[2], c1, n_feats, 1)
    w2, b2 = make_conv(keys[3], keys[4], keys[5], c2, c1, 1)
    w3, b3 = make_conv(keys[6], keys[7], keys[8], n_feats, c2, ksize)
    return w1, b1, w2, b2, w3, b3


def ref_forward(x, w1, b1, w2, b2, w3, b3, res_scale):
    dn = ('NCHW', 'OIHW', 'NCHW')
    h = lax.conv_general_dilated(x, w1, (1, 1), 'SAME', dimension_numbers=dn)
    h = jnp.maximum(h + b1.reshape(1, -1, 1, 1), 0.0)
    h = lax.conv_general_dilated(h, w2, (1, 1), 'SAME', dimension_numbers=dn)
    h = h + b2.reshape(1, -1, 1, 1)
    h = lax.conv_general_dilated(h, w3, (1, 1), 'SAME', dimension_numbers=dn)
    h = h + b3.reshape(1, -1, 1, 1)
    return h * res_scale + x


if __name__ == "__main__":
    key = jax.random.PRNGKey(0)
    kx, kp = jax.random.split(key)

    N, H, W = 2, 16, 16
    n_feats = 8          # expand -> 48, linear -> int(0.8*8) = 6
    ksize = 3
    res_scale = 1.0

    x = jax.random.normal(kx, (N, n_feats, H, W), jnp.float32)   # NCHW
    w1, b1, w2, b2, w3, b3 = init_block_b_params(kp, n_feats, ksize)
    params = prepare_block_b_params(w1, b1, w2, b2, w3, b3, H, W)

    out = block_b_forward(x, params, res_scale=res_scale)
    out = jax.block_until_ready(out)

    ref = ref_forward(x, w1, b1, w2, b2, w3, b3, res_scale)
    assert out.shape == (N, n_feats, H, W)
    # bf16 MXU operands (f32 accumulate) -> slightly loose tolerance vs f32 ref
    err = float(jnp.max(jnp.abs(out - ref)))
    assert jnp.allclose(out, ref, atol=1e-1, rtol=5e-2), f"max abs err {err}"

    print("KERNEL_OK")
</pallas_src>

<mosaic_0001>
module attributes {stable_mosaic.version = 11 : i64} {
  func.func @_block_b_kernel(%arg0: i32, %arg1: memref<1x8x256xf32, #tpu.memory_space<vmem>>, %arg2: memref<48x8xbf16, #tpu.memory_space<vmem>>, %arg3: memref<48x1xf32, #tpu.memory_space<vmem>>, %arg4: memref<8x48xbf16, #tpu.memory_space<vmem>>, %arg5: memref<8x1xf32, #tpu.memory_space<vmem>>, %arg6: memref<8x72xbf16, #tpu.memory_space<vmem>>, %arg7: memref<8x1xf32, #tpu.memory_space<vmem>>, %arg8: memref<9x256xf32, #tpu.memory_space<vmem>>, %arg9: memref<1x8x256xf32, #tpu.memory_space<vmem>>) attributes {dimension_semantics = [#tpu.dimension_semantics<parallel>], iteration_bounds = array<i64: 2>, scalar_prefetch = 0 : i64, scratch_operands = 0 : i64, tpu.core_type = #tpu.core_type<tc>, window_params = [{transform_indices = @transform_0, window_bounds = array<i64: 1, 8, 256>}, {pipeline_mode = #tpu.pipeline_mode<synchronous>, transform_indices = @transform_1, window_bounds = array<i64: 48, 8>}, {pipeline_mode = #tpu.pipeline_mode<synchronous>, transform_indices = @transform_2, window_bounds = array<i64: 48, 1>}, {pipeline_mode = #tpu.pipeline_mode<synchronous>, transform_indices = @transform_3, window_bounds = array<i64: 8, 48>}, {pipeline_mode = #tpu.pipeline_mode<synchronous>, transform_indices = @transform_4, window_bounds = array<i64: 8, 1>}, {pipeline_mode = #tpu.pipeline_mode<synchronous>, transform_indices = @transform_5, window_bounds = array<i64: 8, 72>}, {pipeline_mode = #tpu.pipeline_mode<synchronous>, transform_indices = @transform_6, window_bounds = array<i64: 8, 1>}, {pipeline_mode = #tpu.pipeline_mode<synchronous>, transform_indices = @transform_7, window_bounds = array<i64: 9, 256>}, {transform_indices = @transform_8, window_bounds = array<i64: 1, 8, 256>}]} {
    %c0 = arith.constant 0 : index
    %c0_0 = arith.constant 0 : index
    %c0_1 = arith.constant 0 : index
    %0 = vector.load %arg1[%c0, %c0_0, %c0_1] : memref<1x8x256xf32, #tpu.memory_space<vmem>>, vector<1x8x256xf32>
    %1 = vector.shape_cast %0 : vector<1x8x256xf32> to vector<8x256xf32>
    %2 = arith.truncf %1 : vector<8x256xf32> to vector<8x256xbf16>
    %c0_2 = arith.constant 0 : index
    %c0_3 = arith.constant 0 : index
    %3 = vector.load %arg2[%c0_2, %c0_3] : memref<48x8xbf16, #tpu.memory_space<vmem>>, vector<48x8xbf16>
    %cst = arith.constant dense<0.000000e+00> : vector<48x256xf32>
    %4 = tpu.matmul %3, %2, %cst {dimension_numbers = #tpu.dot_dimension_numbers<[1], [0], [0], [1], [0, 0, 1, 1], [], []>} : vector<48x8xbf16>, vector<8x256xbf16>, vector<48x256xf32> -> vector<48x256xf32>
    %c0_4 = arith.constant 0 : index
    %c0_5 = arith.constant 0 : index
    %5 = vector.load %arg3[%c0_4, %c0_5] : memref<48x1xf32, #tpu.memory_space<vmem>>, vector<48x1xf32>
    %6 = vector.broadcast %5 : vector<48x1xf32> to vector<48x256xf32>
    %7 = arith.addf %4, %6 : vector<48x256xf32>
    %cst_6 = arith.constant 0.000000e+00 : f32
    %8 = vector.broadcast %cst_6 : f32 to vector<48x256xf32>
    %9 = arith.maximumf %7, %8 : vector<48x256xf32>
    %c0_7 = arith.constant 0 : index
    %c0_8 = arith.constant 0 : index
    %10 = vector.load %arg4[%c0_7, %c0_8] : memref<8x48xbf16, #tpu.memory_space<vmem>>, vector<8x48xbf16>
    %11 = arith.truncf %9 : vector<48x256xf32> to vector<48x256xbf16>
    %cst_9 = arith.constant dense<0.000000e+00> : vector<8x256xf32>
    %12 = tpu.matmul %10, %11, %cst_9 {dimension_numbers = #tpu.dot_dimension_numbers<[1], [0], [0], [1], [0, 0, 1, 1], [], []>} : vector<8x48xbf16>, vector<48x256xbf16>, vector<8x256xf32> -> vector<8x256xf32>
    %c0_10 = arith.constant 0 : index
    %c0_11 = arith.constant 0 : index
    %13 = vector.load %arg5[%c0_10, %c0_11] : memref<8x1xf32, #tpu.memory_space<vmem>>, vector<8x1xf32>
    %14 = vector.broadcast %13 : vector<8x1xf32> to vector<8x256xf32>
    %15 = arith.addf %12, %14 : vector<8x256xf32>
    %c0_12 = arith.constant 0 : index
    %c0_13 = arith.constant 0 : index
    %16 = vector.load %arg8[%c0_12, %c0_13] : memref<9x256xf32, #tpu.memory_space<vmem>>, vector<9x256xf32>
    %c17_i32 = arith.constant 17 : i32
    %17 = tpu.dynamic_rotate %15 by %c17_i32 dim 1 : vector<8x256xf32>, i32 -> vector<8x256xf32>
    %18 = vector.extract_strided_slice %16 {offsets = [0, 0], sizes = [1, 256], strides = [1, 1]} : vector<9x256xf32> to vector<1x256xf32>
    %19 = vector.broadcast %18 : vector<1x256xf32> to vector<8x256xf32>
    %20 = arith.mulf %17, %19 : vector<8x256xf32>
    %c16_i32 = arith.constant 16 : i32
    %21 = tpu.dynamic_rotate %15 by %c16_i32 dim 1 : vector<8x256xf32>, i32 -> vector<8x256xf32>
    %22 = vector.extract_strided_slice %16 {offsets = [1, 0], sizes = [1, 256], strides = [1, 1]} : vector<9x256xf32> to vector<1x256xf32>
    %23 = vector.broadcast %22 : vector<1x256xf32> to vector<8x256xf32>
    %24 = arith.mulf %21, %23 : vector<8x256xf32>
    %c15_i32 = arith.constant 15 : i32
    %25 = tpu.dynamic_rotate %15 by %c15_i32 dim 1 : vector<8x256xf32>, i32 -> vector<8x256xf32>
    %26 = vector.extract_strided_slice %16 {offsets = [2, 0], sizes = [1, 256], strides = [1, 1]} : vector<9x256xf32> to vector<1x256xf32>
    %27 = vector.broadcast %26 : vector<1x256xf32> to vector<8x256xf32>
    %28 = arith.mulf %25, %27 : vector<8x256xf32>
    %c1_i32 = arith.constant 1 : i32
    %29 = tpu.dynamic_rotate %15 by %c1_i32 dim 1 : vector<8x256xf32>, i32 -> vector<8x256xf32>
    %30 = vector.extract_strided_slice %16 {offsets = [3, 0], sizes = [1, 256], strides = [1, 1]} : vector<9x256xf32> to vector<1x256xf32>
    %31 = vector.broadcast %30 : vector<1x256xf32> to vector<8x256xf32>
    %32 = arith.mulf %29, %31 : vector<8x256xf32>
    %33 = vector.extract_strided_slice %16 {offsets = [4, 0], sizes = [1, 256], strides = [1, 1]} : vector<9x256xf32> to vector<1x256xf32>
    %34 = vector.broadcast %33 : vector<1x256xf32> to vector<8x256xf32>
    %35 = arith.mulf %15, %34 : vector<8x256xf32>
    %c255_i32 = arith.constant 255 : i32
    %36 = tpu.dynamic_rotate %15 by %c255_i32 dim 1 : vector<8x256xf32>, i32 -> vector<8x256xf32>
    %37 = vector.extract_strided_slice %16 {offsets = [5, 0], sizes = [1, 256], strides = [1, 1]} : vector<9x256xf32> to vector<1x256xf32>
    %38 = vector.broadcast %37 : vector<1x256xf32> to vector<8x256xf32>
    %39 = arith.mulf %36, %38 : vector<8x256xf32>
    %c241_i32 = arith.constant 241 : i32
    %40 = tpu.dynamic_rotate %15 by %c241_i32 dim 1 : vector<8x256xf32>, i32 -> vector<8x256xf32>
    %41 = vector.extract_strided_slice %16 {offsets = [6, 0], sizes = [1, 256], strides = [1, 1]} : vector<9x256xf32> to vector<1x256xf32>
    %42 = vector.broadcast %41 : vector<1x256xf32> to vector<8x256xf32>
    %43 = arith.mulf %40, %42 : vector<8x256xf32>
    %c240_i32 = arith.constant 240 : i32
    %44 = tpu.dynamic_rotate %15 by %c240_i32 dim 1 : vector<8x256xf32>, i32 -> vector<8x256xf32>
    %45 = vector.extract_strided_slice %16 {offsets = [7, 0], sizes = [1, 256], strides = [1, 1]} : vector<9x256xf32> to vector<1x256xf32>
    %46 = vector.broadcast %45 : vector<1x256xf32> to vector<8x256xf32>
    %47 = arith.mulf %44, %46 : vector<8x256xf32>
    %c239_i32 = arith.constant 239 : i32
    %48 = tpu.dynamic_rotate %15 by %c239_i32 dim 1 : vector<8x256xf32>, i32 -> vector<8x256xf32>
    %49 = vector.extract_strided_slice %16 {offsets = [8, 0], sizes = [1, 256], strides = [1, 1]} : vector<9x256xf32> to vector<1x256xf32>
    %50 = vector.broadcast %49 : vector<1x256xf32> to vector<8x256xf32>
    %51 = arith.mulf %48, %50 : vector<8x256xf32>
    %52 = tpu.concatenate %20, %24, %28, %32, %35, %39, %43, %47, %51 in 0 : vector<8x256xf32>, vector<8x256xf32>, vector<8x256xf32>, vector<8x256xf32>, vector<8x256xf32>, vector<8x256xf32>, vector<8x256xf32>, vector<8x256xf32>, vector<8x256xf32> -> vector<72x256xf32>
    %c0_14 = arith.constant 0 : index
    %c0_15 = arith.constant 0 : index
    %53 = vector.load %arg6[%c0_14, %c0_15] : memref<8x72xbf16, #tpu.memory_space<vmem>>, vector<8x72xbf16>
    %54 = arith.truncf %52 : vector<72x256xf32> to vector<72x256xbf16>
    %cst_16 = arith.constant dense<0.000000e+00> : vector<8x256xf32>
    %55 = tpu.matmul %53, %54, %cst_16 {dimension_numbers = #tpu.dot_dimension_numbers<[1], [0], [0], [1], [0, 0, 1, 1], [], []>} : vector<8x72xbf16>, vector<72x256xbf16>, vector<8x256xf32> -> vector<8x256xf32>
    %c0_17 = arith.constant 0 : index
    %c0_18 = arith.constant 0 : index
    %56 = vector.load %arg7[%c0_17, %c0_18] : memref<8x1xf32, #tpu.memory_space<vmem>>, vector<8x1xf32>
    %57 = vector.broadcast %56 : vector<8x1xf32> to vector<8x256xf32>
    %58 = arith.addf %55, %57 : vector<8x256xf32>
    %cst_19 = arith.constant 1.000000e+00 : f32
    %59 = vector.broadcast %cst_19 : f32 to vector<8x256xf32>
    %60 = arith.mulf %58, %59 : vector<8x256xf32>
    %61 = arith.addf %60, %1 : vector<8x256xf32>
    %62 = vector.shape_cast %61 : vector<8x256xf32> to vector<1x8x256xf32>
    %c0_20 = arith.constant 0 : index
    %c0_21 = arith.constant 0 : index
    %c0_22 = arith.constant 0 : index
    %63 = vector.load %arg9[%c0_20, %c0_21, %c0_22] : memref<1x8x256xf32, #tpu.memory_space<vmem>>, vector<1x8x256xf32>
    tpu.vector_store %arg9[%c0_20, %c0_21, %c0_22], %62 {strides = array<i32>} : memref<1x8x256xf32, #tpu.memory_space<vmem>>, vector<1x8x256xf32>,
    return
  }
  func.func @transform_0(%arg0: i32) -> (i32, i32, i32) {
    %c0_i32 = arith.constant 0 : i32
    %c0_i32_0 = arith.constant 0 : i32
    %c0_i32_1 = arith.constant 0 : i32
    return %arg0, %c0_i32, %c0_i32_0 : i32, i32, i32
  }
  func.func @transform_1(%arg0: i32) -> (i32, i32) {
    %c0_i32 = arith.constant 0 : i32
    %c0_i32_0 = arith.constant 0 : i32
    %c0_i32_1 = arith.constant 0 : i32
    return %c0_i32, %c0_i32_0 : i32, i32
  }
  func.func @transform_2(%arg0: i32) -> (i32, i32) {
    %c0_i32 = arith.constant 0 : i32
    %c0_i32_0 = arith.constant 0 : i32
    %c0_i32_1 = arith.constant 0 : i32
    return %c0_i32, %c0_i32_0 : i32, i32
  }
  func.func @transform_3(%arg0: i32) -> (i32, i32) {
    %c0_i32 = arith.constant 0 : i32
    %c0_i32_0 = arith.constant 0 : i32
    %c0_i32_1 = arith.constant 0 : i32
    return %c0_i32, %c0_i32_0 : i32, i32
  }
  func.func @transform_4(%arg0: i32) -> (i32, i32) {
    %c0_i32 = arith.constant 0 : i32
    %c0_i32_0 = arith.constant 0 : i32
    %c0_i32_1 = arith.constant 0 : i32
    return %c0_i32, %c0_i32_0 : i32, i32
  }
  func.func @transform_5(%arg0: i32) -> (i32, i32) {
    %c0_i32 = arith.constant 0 : i32
    %c0_i32_0 = arith.constant 0 : i32
    %c0_i32_1 = arith.constant 0 : i32
    return %c0_i32, %c0_i32_0 : i32, i32
  }
  func.func @transform_6(%arg0: i32) -> (i32, i32) {
    %c0_i32 = arith.constant 0 : i32
    %c0_i32_0 = arith.constant 0 : i32
    %c0_i32_1 = arith.constant 0 : i32
    return %c0_i32, %c0_i32_0 : i32, i32
  }
  func.func @transform_7(%arg0: i32) -> (i32, i32) {
    %c0_i32 = arith.constant 0 : i32
    %c0_i32_0 = arith.constant 0 : i32
    %c0_i32_1 = arith.constant 0 : i32
    return %c0_i32, %c0_i32_0 : i32, i32
  }
  func.func @transform_8(%arg0: i32) -> (i32, i32, i32) {
    %c0_i32 = arith.constant 0 : i32
    %c0_i32_0 = arith.constant 0 : i32
    %c0_i32_1 = arith.constant 0 : i32
    return %arg0, %c0_i32, %c0_i32_0 : i32, i32, i32
  }
}

</mosaic_0001>

<bundles_post_ra>
// kernel: tpu_custom_call.1
= control target key start
LH: loop header
LB: loop body
LE: loop exit
PB: predicated region body
PF: predicated region fallthrough
CT: control target
= control target key end

     0   :  { %13 = vsyncpa [#allocation3], 0  ;;  %s1135_s0 = inlined_call_operand.vmem [shape: f32[2,8,256], index: 0, kind: input, shape index: {}]   ;;  %s1136_s1 = inlined_call_operand.vmem [shape: bf16[48,8], index: 1, kind: input, shape index: {}]   ;;  %s1137_s2 = inlined_call_operand.vmem [shape: f32[48,1], index: 2, kind: input, shape index: {}]   ;;  %s1138_s3 = inlined_call_operand.vmem [shape: bf16[8,48], index: 3, kind: input, shape index: {}]   ;;  %s1139_s4 = inlined_call_operand.vmem [shape: f32[8,1], index: 4, kind: input, shape index: {}]   ;;  %s1140_s5 = inlined_call_operand.vmem [shape: bf16[8,72], index: 5, kind: input, shape index: {}]   ;;  %s1141_s6 = inlined_call_operand.vmem [shape: f32[8,1], index: 6, kind: input, shape index: {}]   ;;  %s1142_s7 = inlined_call_operand.vmem [shape: f32[9,256], index: 7, kind: input, shape index: {}]   ;;  %s1143_s8 = inlined_call_operand.hbm [shape: f32[2,8,256], index: 8, kind: output, shape index: {}]  }
   0x1   :  { %15 = vsyncpa [#allocation3 + $0x1], 0  ;;  %s927_s27 = smov 0   ;;  %s929_s28 = smov 0  }
   0x2   :  { %s931_s29 = smov 0   ;;  %s933_s30 = smov 0  }
   0x3 LB: > { %s948_s9 = sadd.s32 4294967295, %s871_s30   ;;  %s717_s10 = sadd.s32 4294967294, %s871_s30   ;;  %s871_s30 = sphi %s933_s30, %s1149_s30   ;;  %s867_s29 = sphi %s931_s29, %s1148_s29   ;;  %s863_s28 = sphi %s929_s28, %s1147_s28   ;;  %s859_s27 = sphi %s927_s27, %s1146_s27  }
   0x4   : > { %s952_s11 = sadd.s32 1, %s871_s30   ;;  %s201_s12 = sadd.s32 1, %s867_s29 }
   0x5   : > { %s198_s13 = ssub.s32 %s871_s30, %s952_s11  ;;  %p211_p0 = scmp.ne.s32.totalorder %s867_s29, %s863_s28 }
   0x6   : > { %p199_p1 = scmp.eq.s32.totalorder %s198_s13, 0  ;;  %p212_p2 = scmp.eq.s32.totalorder %s948_s9, 1 }
   0x7   : > { %p217_p3 = scmp.ne.s32.totalorder %s863_s28, %s859_s27  ;;  %p218_p4 = scmp.eq.s32.totalorder %s717_s10, 1 }
   0x8   : > { %s963_s14 = scalar_select %p199_p1, %s867_s29, %s201_s12  }
   0x9   : > { %p965_p5 = por %p212_p2, %p211_p0  ;;  %p969_p6 = por %p218_p4, %p217_p3 }
   0xa   : > { %p720_p7 = scmp.ge.s32.totalorder %s871_s30, 1  ;;  %p265_p8 = scmp.lt.s32.totalorder %s871_s30, 3 }
   0xc   : > { %p266_p9 = pnand %p720_p7, %p265_p8 }
   0xd   : > { %p299_p10 = scmp.lt.s32.totalorder (!%p266_p9), %s948_s9, 1  ;;  %s874_s18 = smov (!%p266_p9), 111  }
   0xe   : > { %269 = sbr.rel (%p266_p9) target bundleno = 651 (0x28b), region = 52  ;;  %s875_s19 = smov (!%p266_p9), 113  }
   0xf   : > { %s876_s20 = smov (!%p266_p9), 112   ;;  %s879_s23 = smov (!%p266_p9), 1  }
  0x10   : > { %s880_s24 = smov (!%p266_p9), 17   ;;  %s755_s10 = sshll.u32 (!%p266_p9), %s948_s9, 4 }
  0x11   : > { %s653_s17 = scalar_lea.hbm (!%p266_p9), %s1143_s8, %s755_s10 }
  0x13   : > { %v873_v0 = vmov 0   ;;  %v319_v1 = vld [vmem:[%s1137_s2 + $0x20] sm:$0xff]  ;;  %v317_v2 = vld [vmem:[%s1137_s2 + $0x10] sm:$0xff]  ;;  %s300_s21 = scalar_select %p299_p10, %s948_s9, 1  ;;  %vm376_vm0 = vcmask 1043456   ;;  %vm366_vm1 = vcmask 64512  }
  0x14   : > { %805 = vset.pattern.permute.xlu1 %v873_v0  ;;  %804 = vset.pattern.permute.xlu0 %v873_v0  ;;  %v752_v9 = vld [vmem:[%s1136_s1] sm:$0xff]  ;;  %v320_v10 = vld [vmem:[%s1137_s2 + $0x28] sm:$0xff]  ;;  %v318_v11 = vld [vmem:[%s1137_s2 + $0x18] sm:$0xff]  ;;  %vm456_vm2 = vcmask 392192   ;;  %vm601_vm11 = vcmask 588800  }
  0x15   : > { %343 = vperm.xlu0 %804, %v319_v1   ;;  %333 = vperm.xlu1 %805, %v317_v2   ;;  %s751_s22 = sshll.u32 %s300_s21, 4  ;;  %v315_v12 = vld [vmem:[%s1137_s2] sm:$0xff]  ;;  %v316_v14 = vld [vmem:[%s1137_s2 + $0x8] sm:$0xff]  ;;  %v754_v16 = vld [vmem:[%s1136_s1 + $0x10] sm:$0xff]  ;;  %s877_s21 = smov 127  }
  0x16   : > { %806 = vset.pattern.permute.xlu2 %v873_v0  ;;  %s303_s25 = scalar_lea.vmem %s1135_s0, %s751_s22  ;;  %v450_v13 = vld [vmem:[%s1139_s4] sm:$0xff]  ;;  %v753_v15 = vld [vmem:[%s1136_s1 + $0x8] sm:$0xff]  ;;  %s878_s22 = smov 15  }
  0x17   : > { %v986_v3 = vld [vmem:[%s303_s25] sm:$0xff]  ;;  %v988_v4 = vld [vmem:[%s303_s25 + $0x8] sm:$0xff]  ;;  %323 = vperm.xlu2 %806, %v315_v12   ;;  %s881_s25 = smov 16   ;;  %v494_v12 = vlaneseq }
  0x18   : > { %v307_v5 = vpack.c.bf16 %v986_v3, %v986_v3  ;;  %v308_v6 = vpack.c.bf16 %v988_v4, %v988_v4  ;;  %v443_v1 = vld [vmem:[%s1138_s3] sm:$0xf] }
  0x1a   : > { %v378_v7 = vsel %vm376_vm0, %v307_v5, 0  ;;  %v381_v8 = vsel %vm376_vm0, %v308_v6, 0 }
  0x1b   : > { %390 = vmatpush.bf16.msra.mxu0 %v378_v7  ;;  %414 = vmatpush.bf16.msra.mxu1 %v381_v8 }
  0x1d   : > { %348 = vperm.xlu0 %804, %v320_v10   ;;  %338 = vperm.xlu1 %805, %v318_v11   ;;  %v595_v11 = vld [vmem:[%s1141_s6] sm:$0xff] }
  0x1e   : > { %736 = vmatmul.msk.bf16.vlgmr.msra.gmra.mxu0 %vm366_vm1, %v752_v9  ;;  %739 = vmatmul.msk.bf16.vlgmr.msra.gmra.mxu1 %vm366_vm1, %v752_v9 }
  0x1f   : > { %328 = vperm.xlu2 %806, %v316_v14   ;;  %v1052_v14 = vand.u32 127, %v494_v12 }
  0x21   : > { %vm577_vm3 = vcmp.lt.s32.totalorder %v1052_v14, 111  ;;  %vm566_vm4 = vcmp.lt.s32.totalorder %v1052_v14, 112  ;;  %vm555_vm5 = vcmp.lt.s32.totalorder %v1052_v14, 113  ;;  %vm544_vm6 = vcmp.lt.s32.totalorder %v1052_v14, 127 }
  0x22   : > { %vm529_vm7 = vcmp.lt.s32.totalorder %v1052_v14, 1  ;;  %vm518_vm8 = vcmp.lt.s32.totalorder %v1052_v14, 15  ;;  %vm496_vm9 = vcmp.lt.s32.totalorder %v1052_v14, 17  ;;  %vm507_vm10 = vcmp.lt.s32.totalorder %v1052_v14, 16  ;;  %v584_v14 = vld [vmem:[%s1140_s5] sm:$0xf] }
  0x25   : > { %453 = vperm.xlu0 %804, %v450_v13  }
  0x2e   : > { %737 = vmatmul.msk.bf16.gmra.mxu0 %vm366_vm1, %v753_v15  ;;  %740 = vmatmul.msk.bf16.gmra.mxu1 %vm366_vm1, %v753_v15  ;;  %v807_v15 = vld [vmem:[%s1142_s7 + $0x10] ss:$0 sm:$0xff] }
  0x3e   : > { %738 = vmatmul.msk.bf16.gmra.mxu0 %vm366_vm1, %v754_v16  ;;  %741 = vmatmul.msk.bf16.gmra.mxu1 %vm366_vm1, %v754_v16  ;;  %v808_v16 = vld [vmem:[%s1142_s7 + $0x18] ss:$0 sm:$0xff] }
  0x71   : > { %v324_v27 = vpop.permute.xlu2 %323 }
  0x79   : > { %v329_v37 = vpop.permute.xlu2 %328 }
  0x87   : > { %v334_v25 = vpop.permute.xlu1 %333  ;;  %v344_v26 = vpop.permute.xlu0 %343 }
  0x8f   : > { %v339_v30 = vpop.permute.xlu1 %338  ;;  %v349_v31 = vpop.permute.xlu0 %348 }
  0x97   : > { %v454_v2 = vpop.permute.xlu0 %453 }
  0x9b   : > { %v392_v17 = vpop.f32.mrf.mxu0  ;;  %v416_v18 = vpop.f32.mrf.mxu1 }
  0x9c   : > { %v417_v47 = vadd.f32 %v416_v18, %v324_v27  ;;  %v393_v55 = vadd.f32 %v392_v17, %v324_v27  ;;  %v1069_v27 = vld [vmem:[%s1142_s7 + $0x8] sm:$0xff] }
  0x9e   : > { %v432_v57 = vmax.f32 %v417_v47, 0.0  ;;  %v431_v62 = vmax.f32 %v393_v55, 0.0 }
  0xa3   : > { %v394_v19 = vpop.f32.mrf.mxu0  ;;  %v418_v20 = vpop.f32.mrf.mxu1 }
  0xa4   : > { %v395_v48 = vadd.f32 %v394_v19, %v329_v37  ;;  %v419_v49 = vadd.f32 %v418_v20, %v329_v37 }
  0xa6   : > { %v433_v58 = vmax.f32 %v395_v48, 0.0  ;;  %v434_v59 = vmax.f32 %v419_v49, 0.0  ;;  %v548_v49 = vperm.slane %v1069_v27, 5 }
  0xa8   : > { %v444_v63 = vpack.c.bf16 %v433_v58, %v431_v62  ;;  %v445_v0 = vpack.c.bf16 %v434_v59, %v432_v57  ;;  %v533_v62 = vperm.slane %v1069_v27, 3 }
  0xab   : > { %v397_v21 = vpop.f32.mrf.mxu0  ;;  %v421_v22 = vpop.f32.mrf.mxu1 }
  0xac   : > { %v422_v34 = vadd.f32 %v421_v22, %v334_v25  ;;  %v398_v42 = vadd.f32 %v397_v21, %v334_v25 }
  0xae   : > { %v436_v50 = vmax.f32 %v422_v34, 0.0  ;;  %v435_v56 = vmax.f32 %v398_v42, 0.0 }
  0xb3   : > { %v399_v23 = vpop.f32.mrf.mxu0  ;;  %v423_v24 = vpop.f32.mrf.mxu1 }
  0xb4   : > { %v400_v38 = vadd.f32 %v399_v23, %v339_v30  ;;  %v424_v39 = vadd.f32 %v423_v24, %v339_v30 }
  0xb6   : > { %v437_v51 = vmax.f32 %v400_v38, 0.0  ;;  %v438_v52 = vmax.f32 %v424_v39, 0.0 }
  0xb8   : > { %v446_v60 = vpack.c.bf16 %v437_v51, %v435_v56  ;;  %v447_v61 = vpack.c.bf16 %v438_v52, %v436_v50  ;;  %v537_v50 = vperm.slane %v1069_v27, 4 }
  0xbb   : > { %v402_v28 = vpop.f32.mrf.mxu0  ;;  %v426_v29 = vpop.f32.mrf.mxu1 }
  0xbc   : > { %v403_v32 = vadd.f32 %v402_v28, %v344_v26  ;;  %v427_v33 = vadd.f32 %v426_v29, %v344_v26  ;;  %v1064_v26 = vld [vmem:[%s1142_s7] sm:$0xff]  ;;  %v570_v29 = vperm.slane %v1069_v27, 7 }
  0xbd   : > { %v569_v28 = vperm.slane %v1064_v26, 7  ;;  %v536_v47 = vperm.slane %v1064_v26, 4  ;;  %v547_v48 = vperm.slane %v1064_v26, 5 }
  0xbe   : > { %v439_v43 = vmax.f32 %v403_v32, 0.0  ;;  %v440_v44 = vmax.f32 %v427_v33, 0.0  ;;  %v558_v32 = vperm.slane %v1064_v26, 6  ;;  %v559_v33 = vperm.slane %v1069_v27, 6 }
  0xc3   : > { %v404_v35 = vpop.f32.mrf.mxu0  ;;  %v428_v36 = vpop.f32.mrf.mxu1 }
  0xc4   : > { %v405_v40 = vadd.f32 %v404_v35, %v349_v31  ;;  %v429_v41 = vadd.f32 %v428_v36, %v349_v31 }
  0xc6   : > { %v441_v45 = vmax.f32 %v405_v40, 0.0  ;;  %v442_v46 = vmax.f32 %v429_v41, 0.0 }
  0xc8   : > { %v448_v53 = vpack.c.bf16 %v441_v45, %v439_v43  ;;  %v449_v54 = vpack.c.bf16 %v442_v46, %v440_v44 }
  0xca   : > { %465 = vmatpush.bf16.msra.mxu2 %v448_v53  ;;  %478 = vmatpush.bf16.msra.mxu3 %v449_v54 }
  0xce   : > { %466 = vmatpush.bf16.msra.mxu2 %v446_v60  ;;  %479 = vmatpush.bf16.msra.mxu3 %v447_v61  ;;  %v532_v61 = vperm.slane %v1064_v26, 3 }
  0xd2   : > { %467 = vmatpush.bf16.msra.mxu2 %v444_v63  ;;  %480 = vmatpush.bf16.msra.mxu3 %v445_v0  ;;  %v521_v63 = vperm.slane %v1064_v26, 2  ;;  %v522_v0 = vperm.slane %v1069_v27, 2 }
  0xd5   : > { %742 = vmatmul.msk.bf16.vlgmr.msra.gmra.mxu2 %vm456_vm2, %v443_v1  ;;  %743 = vmatmul.msk.bf16.vlgmr.msra.gmra.mxu3 %vm456_vm2, %v443_v1 }
 0x158   : > { %v469_v5 = vpop.f32.mrf.mxu2  ;;  %v482_v6 = vpop.f32.mrf.mxu3 }
 0x159   : > { %v1029_v7 = vadd.f32 %v469_v5, %v454_v2  ;;  %v1031_v8 = vadd.f32 %v482_v6, %v454_v2 }
 0x15b   : > { %575 = vrot.lane.b32.xlu2 %v1031_v8, %s874_s18  ;;  %551 = vrot.lane.b32.xlu0 %v1029_v7, %s875_s19  ;;  %v538_v57 = vmul.f32 %v536_v47, %v1029_v7  ;;  %v539_v58 = vmul.f32 %v537_v50, %v1031_v8 }
 0x15c   : > { %573 = vrot.lane.b32.xlu1 %v1029_v7, %s874_s18 }
 0x160   : > { %v471_v9 = vpop.f32.mrf.mxu2  ;;  %v484_v10 = vpop.f32.mrf.mxu3 }
 0x163   : > { %562 = vrot.lane.b32.xlu2 %v1029_v7, %s876_s20  ;;  %564 = vrot.lane.b32.xlu0 %v1031_v8, %s876_s20  ;;  %s657_s20 = sshll.u32 %s653_s17, 4  ;;  %s658_s20 = int_to_ptr.hbm [resolvable:$true] %s657_s20 }
 0x164   : > { %553 = vrot.lane.b32.xlu1 %v1031_v8, %s875_s19 }
 0x16b   : > { %542 = vrot.lane.b32.xlu2 %v1031_v8, %s877_s21  ;;  %514 = vrot.lane.b32.xlu0 %v1029_v7, %s878_s22 }
 0x16c   : > { %540 = vrot.lane.b32.xlu1 %v1029_v7, %s877_s21  ;;  %s823_s21 = sshra.s32 %s658_s20, 4  ;;  %s824_s21 = int_to_ptr.hbm [resolvable:$true] %s823_s21 }
 0x16d   : > { %p830_p0 = scmp.lt.s32.totalorder %s824_s21, %s1143_s8 }
 0x173   : > { %525 = vrot.lane.b32.xlu2 %v1029_v7, %s879_s23  ;;  %527 = vrot.lane.b32.xlu0 %v1031_v8, %s879_s23 }
 0x174   : > { %516 = vrot.lane.b32.xlu1 %v1031_v8, %s878_s22  ;;  %s825_s22 = scalar_lea.hbm %s824_s21, 16 }
 0x175   : > { %p826_p11 = scmp.ne.s32.totalorder %s824_s21, %s825_s22 }
 0x177   : > { %p827_p12 = pnand %p826_p11, %p965_p5 }
 0x179   : > { %p828_p13 = pneg %p827_p12 }
 0x17b   : > { %492 = vrot.lane.b32.xlu2 %v1031_v8, %s880_s24  ;;  %503 = vrot.lane.b32.xlu0 %v1029_v7, %s881_s25 }
 0x17c   : > { %490 = vrot.lane.b32.xlu1 %v1029_v7, %s880_s24 }
 0x183   : > { %598 = vperm.xlu2 %806, %v595_v11  }
 0x184   : > { %505 = vrot.lane.b32.xlu1 %v1031_v8, %s881_s25  ;;  %s296_s25 = sand.u32 1, %s863_s28  }
 0x185   : > { %s721_s26 = sshll.u32 %s296_s25, 4  ;;  %s642_s9 = scalar_lea.sflag [#allocation3], %s296_s25 }
 0x186   : > { %s298_s18 = scalar_lea.vmem [#allocation2], %s721_s26  ;;  %s829_s26 = scalar_lea.hbm %s1143_s8, 32 }
 0x187   : > { %s655_s19 = sshll.u32 %s298_s18, 4  ;;  %p831_p1 = scmp.lt.s32.totalorder %s829_s26, %s825_s22  ;;  %s656_s19 = int_to_ptr.vmem [resolvable:$true] %s655_s19 }
 0x189   : > { %p832_p2 = por %p831_p1, %p830_p0 }
 0x18b   : > { %p833_p3 = pnand %p832_p2, %p828_p13 }
 0x1b5   : > { %v576_v13 = vpop.permute.xlu2 %575 }
 0x1bd   : > { %v563_v23 = vpop.permute.xlu2 %562 }
 0x1c5   : > { %v543_v46 = vpop.permute.xlu2 %542 }
 0x1cd   : > { %v552_v17 = vpop.permute.xlu0 %551  ;;  %v526_v1 = vpop.permute.xlu2 %525 }
 0x1ce   : > { %v574_v18 = vpop.permute.xlu1 %573 }
 0x1cf   : > { %v578_v19 = vsel %vm577_vm3, %v574_v18, %v576_v13  ;;  %v579_v20 = vsel %vm577_vm3, %v576_v13, %v574_v18  ;;  %v499_v18 = vperm.slane %v1064_v26, 0 }
 0x1d0   : > { %v582_v21 = vmul.f32 %v807_v15, %v578_v19  ;;  %v583_v22 = vmul.f32 %v808_v16, %v579_v20  ;;  %v500_v20 = vperm.slane %v1069_v27, 0 }
 0x1d2   : > { %v593_v24 = vpack.c.bf16 %v582_v21, %v582_v21  ;;  %v594_v25 = vpack.c.bf16 %v583_v22, %v583_v22  ;;  %v510_v21 = vperm.slane %v1064_v26, 1  ;;  %v511_v22 = vperm.slane %v1069_v27, 1 }
 0x1d4   : > { %v606_v30 = vsel %vm376_vm0, %v593_v24, 0  ;;  %v609_v31 = vsel %vm376_vm0, %v594_v25, 0 }
 0x1d5   : > { %614 = vmatpush.bf16.msrb.mxu2 %v606_v30  ;;  %627 = vmatpush.bf16.msrb.mxu3 %v609_v31  ;;  %v565_v34 = vpop.permute.xlu0 %564  ;;  %v493_v19 = vpop.permute.xlu2 %492 }
 0x1d6   : > { %v567_v35 = vsel %vm566_vm4, %v563_v23, %v565_v34  ;;  %v568_v36 = vsel %vm566_vm4, %v565_v34, %v563_v23  ;;  %v554_v37 = vpop.permute.xlu1 %553 }
 0x1d7   : > { %v571_v38 = vmul.f32 %v569_v28, %v567_v35  ;;  %v572_v39 = vmul.f32 %v570_v29, %v568_v36  ;;  %v556_v40 = vsel %vm555_vm5, %v552_v17, %v554_v37  ;;  %v557_v41 = vsel %vm555_vm5, %v554_v37, %v552_v17 }
 0x1d8   : > { %v560_v42 = vmul.f32 %v558_v32, %v556_v40  ;;  %v561_v43 = vmul.f32 %v559_v33, %v557_v41 }
 0x1da   : > { %v591_v44 = vpack.c.bf16 %v571_v38, %v560_v42  ;;  %v592_v45 = vpack.c.bf16 %v572_v39, %v561_v43 }
 0x1dc   : > { %615 = vmatpush.bf16.msrb.mxu2 %v591_v44  ;;  %628 = vmatpush.bf16.msrb.mxu3 %v592_v45 }
 0x1dd   : > { %v515_v51 = vpop.permute.xlu0 %514  ;;  %v599_v26 = vpop.permute.xlu2 %598 }
 0x1de   : > { %v541_v52 = vpop.permute.xlu1 %540 }
 0x1df   : > { %v545_v53 = vsel %vm544_vm6, %v541_v52, %v543_v46  ;;  %v546_v54 = vsel %vm544_vm6, %v543_v46, %v541_v52 }
 0x1e0   : > { %v549_v55 = vmul.f32 %v547_v48, %v545_v53  ;;  %v550_v56 = vmul.f32 %v548_v49, %v546_v54 }
 0x1e2   : > { %v589_v59 = vpack.c.bf16 %v549_v55, %v538_v57  ;;  %v590_v60 = vpack.c.bf16 %v550_v56, %v539_v58 }
 0x1e4   : > { %616 = vmatpush.bf16.msrb.mxu2 %v589_v59  ;;  %629 = vmatpush.bf16.msrb.mxu3 %v590_v60 }
 0x1e5   : > { %v528_v2 = vpop.permute.xlu0 %527 }
 0x1e6   : > { %v530_v5 = vsel %vm529_vm7, %v526_v1, %v528_v2  ;;  %v531_v6 = vsel %vm529_vm7, %v528_v2, %v526_v1  ;;  %v517_v7 = vpop.permute.xlu1 %516 }
 0x1e7   : > { %v534_v8 = vmul.f32 %v532_v61, %v531_v6  ;;  %v535_v9 = vmul.f32 %v533_v62, %v530_v5  ;;  %v519_v10 = vsel %vm518_vm8, %v515_v51, %v517_v7  ;;  %v520_v11 = vsel %vm518_vm8, %v517_v7, %v515_v51 }
 0x1e8   : > { %v523_v12 = vmul.f32 %v521_v63, %v520_v11  ;;  %v524_v13 = vmul.f32 %v522_v0, %v519_v10 }
 0x1ea   : > { %v587_v15 = vpack.c.bf16 %v534_v8, %v523_v12  ;;  %v588_v16 = vpack.c.bf16 %v535_v9, %v524_v13 }
 0x1ec   : > { %617 = vmatpush.bf16.msrb.mxu2 %v587_v15  ;;  %630 = vmatpush.bf16.msrb.mxu3 %v588_v16 }
 0x1ed   : > { %v504_v25 = vpop.permute.xlu0 %503 }
 0x1ee   : > { %v491_v17 = vpop.permute.xlu1 %490 }
 0x1ef   : > { %v497_v23 = vsel %vm496_vm9, %v491_v17, %v493_v19  ;;  %v498_v24 = vsel %vm496_vm9, %v493_v19, %v491_v17 }
 0x1f0   : > { %v501_v31 = vmul.f32 %v499_v18, %v498_v24  ;;  %v502_v32 = vmul.f32 %v500_v20, %v497_v23 }
 0x1f6   : > { %v506_v28 = vpop.permute.xlu1 %505 }
 0x1f7   : > { %v508_v29 = vsel %vm507_vm10, %v504_v25, %v506_v28  ;;  %v509_v30 = vsel %vm507_vm10, %v506_v28, %v504_v25 }
 0x1f8   : > { %v512_v33 = vmul.f32 %v510_v21, %v509_v30  ;;  %v513_v34 = vmul.f32 %v511_v22, %v508_v29 }
 0x1fa   : > { %v585_v35 = vpack.c.bf16 %v512_v33, %v501_v31  ;;  %v586_v36 = vpack.c.bf16 %v513_v34, %v502_v32 }
 0x1fc   : > { %618 = vmatpush.bf16.msrb.mxu2 %v585_v35  ;;  %631 = vmatpush.bf16.msrb.mxu3 %v586_v36 }
 0x1ff   : > { %744 = vmatmul.msk.bf16.vlgmr.msrb.gmra.mxu2 %vm601_vm11, %v584_v14  ;;  %745 = vmatmul.msk.bf16.vlgmr.msrb.gmra.mxu3 %vm601_vm11, %v584_v14 }
 0x282   : > { %v620_v27 = vpop.f32.mrf.mxu2  ;;  %v633_v37 = vpop.f32.mrf.mxu3 }
 0x283   : > { %v621_v38 = vadd.f32 %v620_v27, %v599_v26  ;;  %v634_v39 = vadd.f32 %v633_v37, %v599_v26 }
 0x285   : > { %v637_v40 = vadd.f32 %v621_v38, %v986_v3  ;;  %v638_v41 = vadd.f32 %v634_v39, %v988_v4 }
 0x287   : > { %639 = vst [vmem:[%s298_s18] sm:$0xff] %v637_v40 }
 0x288   : > { %640 = vst [vmem:[%s298_s18 + $0x8] sm:$0xff] %v638_v41 }
 0x289   : > { %836 = shalt.err (!%p833_p3)
}
 0x28a   : > { %756 = dma.vmem_to_hbm [thread:$0]  (%p965_p5), %s656_s19, 256, %s658_s20, %s642_s9   ;;  %v622_v3 = vpop.f32.mrf.mxu2  ;;  %v635_v4 = vpop.f32.mrf.mxu3 }
 0x28b PF: > { %p762_p4 = scmp.ge.s32.totalorder %s871_s30, 2  ;;  %s669_s25 = sand.u32 1, %s859_s27  }
 0x28c   : > { %s670_s13 = scalar_lea.sflag [#allocation3], %s669_s25 }
 0x28d   : > { %p759_p7 = pnand %p762_p4, %p969_p6 }
 0x28f   : > { %p760_p8 = pneg %p759_p7 }
 0x291   : > { %854 = dma.done.wait (%p760_p8), %s670_s13, 256  }
 0x292   : > { %856 = vsyncadd (%p760_p8), %s670_s13, 4294967040  ;;  %p18_p5 = scmp.ge.s32.totalorder %s952_s11, 4   ;;  %s1146_s27 = smov %s863_s28 }
 0x293   : > { %s1147_s28 = smov %s867_s29  ;;  %s1148_s29 = smov %s963_s14 }
 0x294   : > { %s1149_s30 = smov %s952_s11  ;;  %20 = sbr.rel (!%p18_p5) target bundleno = 3 (0x3), region = 87 }
 0x299   :  { %676 = vsyncpa [#allocation3], 1 }
 0x29a   :  { %678 = vsyncpa [#allocation3 + $0x1], 1 }

</bundles_post_ra>
